<compile_context>
chip_gen: v6e
topology: v6e:2x2x1
jax: 0.10.0
libtpu: 0.0.40
codegen_flags: <defaults>
</compile_context>

<pallas_src>
import jax
import jax.numpy as jnp
from jax.experimental import pallas as pl
from jax.experimental.pallas import tpu as pltpu


def _round_up(n, m):
    return ((n + m - 1) // m) * m


def _pad2d(a, rows, cols):
    return jnp.pad(a, ((0, rows - a.shape[0]), (0, cols - a.shape[1])))


def _vmem_budget_bytes():
    """Physical VMEM (per TensorCore) minus ~15% headroom; conservative fallback."""
    try:
        info = pltpu.get_tpu_info()
        cap = getattr(info, "vmem_capacity_bytes", None)
        if cap:
            return int(cap * 0.85)
    except Exception:
        pass
    return int(64 * 1024 * 1024 * 0.85)   # v7x has the smallest VMEM (64 MiB)


def _estimate_vmem_bytes(tb, tn, nj, Lp, H1p, H2p, w_isz, o_isz, single_buffer):
    """Tightened live-bytes estimate for one pipelined grid step."""
    cbuf = 1 if single_buffer else 2          # grid-constant weight blocks
    w3buf = cbuf if nj == 1 else 2            # w3 changes with j when N-tiled
    weights = cbuf * ((Lp * H1p + H1p * H2p) * w_isz + (H1p + H2p) * 4)
    weights += w3buf * (H2p * tn * w_isz + tn * 4)
    io = 2 * tb * (Lp * w_isz + tn * o_isz)   # double-buffered x / out tiles
    scratch = tb * H2p * w_isz                # resident bf16 h2 scratch
    temps = tb * (H1p + H2p) * 4              # f32 h1 / h2
    temps += tb * (H1p + H2p) * w_isz         # bf16 copies feeding the dots
    temps += 2 * tb * tn * 4                  # f32 h3 + sigmoid temporary
    margin = 2 * 1024 * 1024                  # Mosaic internal scratch
    return weights + io + scratch + temps + margin


def decoder_kernel(x_ref, w1_ref, b1_ref, w2_ref, b2_ref, w3_ref, b3_ref,
                   o_ref, h2_ref):
    # Layers 1+2 only need to run once per batch tile (the OUT axis is the
    # innermost grid axis); their result is kept in a VMEM scratch in bf16.
    @pl.when(pl.program_id(1) == 0)
    def _():
        h1 = jnp.dot(x_ref[...], w1_ref[...], preferred_element_type=jnp.float32)
        h1 = jnp.maximum(h1 + b1_ref[...], 0.0)
        h2 = jnp.dot(h1.astype(w2_ref.dtype), w2_ref[...],
                     preferred_element_type=jnp.float32)
        h2 = jnp.maximum(h2 + b2_ref[...], 0.0)
        h2_ref[...] = h2.astype(h2_ref.dtype)

    # Layer 3 (possibly N-tiled over the output features) + Sigmoid.
    h3 = jnp.dot(h2_ref[...], w3_ref[...], preferred_element_type=jnp.float32)
    o_ref[...] = jax.nn.sigmoid(h3 + b3_ref[...]).astype(o_ref.dtype)


def prepare_decoder_params(params, *, use_bf16=True):
    """One-time pad to lane multiples + bf16 cast (hoisted out of the hot path)."""
    w1, b1 = params["w1"], params["b1"]
    w2, b2 = params["w2"], params["b2"]
    w3, b3 = params["w3"], params["b3"]
    L, H1 = w1.shape
    H2, OUT = w2.shape[1], w3.shape[1]

    mm_dtype = jnp.bfloat16 if use_bf16 else jnp.float32
    itemsize = jnp.dtype(mm_dtype).itemsize

    Lp, H1p, H2p, OUTp = (_round_up(d, 128) for d in (L, H1, H2, OUT))

    # N-tile layer 3 for wide decoders so the (H2, OUT) slab never has to be
    # fully resident (required to fit v7x's 64 MiB VMEM).
    budget = _vmem_budget_bytes()
    if H2p * OUTp * itemsize > budget // 4:
        tn = min(1024, OUTp)
        OUTp = _round_up(OUTp, tn)
    else:
        tn = OUTp

    prep = {
        "w1": _pad2d(w1, Lp, H1p).astype(mm_dtype),
        "w2": _pad2d(w2, H1p, H2p).astype(mm_dtype),
        "w3": _pad2d(w3, H2p, OUTp).astype(mm_dtype),
        "b1": _pad2d(b1, 1, H1p).astype(jnp.float32),
        "b2": _pad2d(b2, 1, H2p).astype(jnp.float32),
        "b3": _pad2d(b3, 1, OUTp).astype(jnp.float32),
        "dims": (L, H1, H2, OUT),
        "padded": (Lp, H1p, H2p, OUTp),
        "tn": tn,
        "mm_dtype": mm_dtype,
    }
    return prep


def decoder_forward(x, prep, *, batch_tile=None, out_dtype=jnp.float32):
    """x: (B, latent) f32; prep: output of prepare_decoder_params."""
    B = x.shape[0]
    L, H1, H2, OUT = prep["dims"]
    Lp, H1p, H2p, OUTp = prep["padded"]
    tn = prep["tn"]
    nj = OUTp // tn
    mm_dtype = prep["mm_dtype"]
    w_isz = jnp.dtype(mm_dtype).itemsize
    o_isz = jnp.dtype(out_dtype).itemsize

    budget = _vmem_budget_bytes()
    single_buffer_ok = hasattr(pl, "Buffered")

    # Batch tile: 256 fills the 256-wide MXU on v6e/v7x (also fine on v5e's
    # 128-wide MXU); for small batches track the real batch (16 = bf16
    # sublane pack) instead of padding up to 128+.
    if batch_tile is None:
        batch_tile = 256
    tb = min(batch_tile, _round_up(B, 16))
    while tb > 16 and _estimate_vmem_bytes(
            tb, tn, nj, Lp, H1p, H2p, w_isz, o_isz, single_buffer_ok) > budget:
        tb = max(16, _round_up(tb // 2, 16))

    Bp = _round_up(B, tb)
    xp = _pad2d(x, Bp, Lp).astype(mm_dtype)

    est = _estimate_vmem_bytes(tb, tn, nj, Lp, H1p, H2p, w_isz, o_isz,
                               single_buffer_ok)
    compiler_kwargs = dict(dimension_semantics=("parallel", "arbitrary"))
    if est > 32 * 1024 * 1024:
        compiler_kwargs["vmem_limit_bytes"] = int(min(est * 1.25, budget))

    def _call(single_buffer):
        const_kw = dict(pipeline_mode=pl.Buffered(1)) if single_buffer else {}
        # w3/b3 blocks are only grid-constant when the OUT axis is not tiled.
        w3_kw = const_kw if nj == 1 else {}
        in_specs = [
            pl.BlockSpec((tb, Lp), lambda i, j: (i, 0)),
            pl.BlockSpec((Lp, H1p), lambda i, j: (0, 0), **const_kw),
            pl.BlockSpec((1, H1p), lambda i, j: (0, 0), **const_kw),
            pl.BlockSpec((H1p, H2p), lambda i, j: (0, 0), **const_kw),
            pl.BlockSpec((1, H2p), lambda i, j: (0, 0), **const_kw),
            pl.BlockSpec((H2p, tn), lambda i, j: (0, j), **w3_kw),
            pl.BlockSpec((1, tn), lambda i, j: (0, j), **w3_kw),
        ]
        out = pl.pallas_call(
            decoder_kernel,
            out_shape=jax.ShapeDtypeStruct((Bp, OUTp), out_dtype),
            grid_spec=pltpu.PrefetchScalarGridSpec(
                num_scalar_prefetch=0,
                grid=(Bp // tb, nj),
                in_specs=in_specs,
                out_specs=pl.BlockSpec((tb, tn), lambda i, j: (i, j)),
                scratch_shapes=[pltpu.VMEM((tb, H2p), mm_dtype)],
            ),
            compiler_params=pltpu.CompilerParams(**compiler_kwargs),
        )(xp, prep["w1"], prep["b1"], prep["w2"], prep["b2"],
          prep["w3"], prep["b3"])
        return jax.block_until_ready(out)

    if single_buffer_ok:
        try:
            out = _call(True)
        except Exception:
            # Conservative fallback if Buffered(1) is rejected by this JAX/Mosaic.
            out = _call(False)
    else:
        out = _call(False)

    # Strip batch / feature padding.
    return out[:B, :OUT]


def init_decoder_params(key, input_size, latent_size):
    """Deterministic init matching nn.Linear shapes (weights stored transposed)."""
    dims = [latent_size, input_size // 4, input_size // 2, input_size]
    params = {}
    for idx, (fan_in, fan_out) in enumerate(zip(dims[:-1], dims[1:]), start=1):
        key, kw, kb = jax.random.split(key, 3)
        bound = 1.0 / (fan_in ** 0.5)  # same scale as PyTorch default Linear init
        params[f"w{idx}"] = jax.random.uniform(
            kw, (fan_in, fan_out), jnp.float32, -bound, bound)
        params[f"b{idx}"] = jax.random.uniform(
            kb, (1, fan_out), jnp.float32, -bound, bound)
    return params


def decoder_reference(x, params, *, use_bf16=True):
    """Pure-JAX reference mirroring the kernel's numerics (bf16 matmul, f32 acc)."""
    cdt = jnp.bfloat16 if use_bf16 else jnp.float32
    h = jnp.dot(x.astype(cdt), params["w1"].astype(cdt),
                preferred_element_type=jnp.float32)
    h = jnp.maximum(h + params["b1"], 0.0)
    h = jnp.dot(h.astype(cdt), params["w2"].astype(cdt),
                preferred_element_type=jnp.float32)
    h = jnp.maximum(h + params["b2"], 0.0)
    h = jnp.dot(h.astype(cdt), params["w3"].astype(cdt),
                preferred_element_type=jnp.float32)
    return jax.nn.sigmoid(h + params["b3"])


if __name__ == "__main__":
    INPUT_SIZE = 64     # -> hidden dims 16, 32, 64 (input//4, input//2, input)
    LATENT_SIZE = 10
    BATCH = 8

    key = jax.random.PRNGKey(0)
    key, kx = jax.random.split(key)
    x = jax.random.normal(kx, (BATCH, LATENT_SIZE), jnp.float32)

    params = init_decoder_params(key, INPUT_SIZE, LATENT_SIZE)

    # One-time weight pad + bf16 cast, done outside the forward hot path.
    prep = prepare_decoder_params(params)
    for name in ("w1", "b1", "w2", "b2", "w3", "b3"):
        prep[name].block_until_ready()

    out = decoder_forward(x, prep)
    out = jax.block_until_ready(out)

    ref = decoder_reference(x, params)
    assert out.shape == (BATCH, INPUT_SIZE)
    assert jnp.allclose(out, ref, atol=2e-3, rtol=2e-3), \
        float(jnp.max(jnp.abs(out - ref)))

    print("KERNEL_OK")
</pallas_src>

<mosaic_0001>
module attributes {stable_mosaic.version = 11 : i64} {
  func.func @decoder_kernel(%arg0: i32, %arg1: i32, %arg2: memref<16x128xbf16, #tpu.memory_space<vmem>>, %arg3: memref<128x128xbf16, #tpu.memory_space<vmem>>, %arg4: memref<1x128xf32, #tpu.memory_space<vmem>>, %arg5: memref<128x128xbf16, #tpu.memory_space<vmem>>, %arg6: memref<1x128xf32, #tpu.memory_space<vmem>>, %arg7: memref<128x128xbf16, #tpu.memory_space<vmem>>, %arg8: memref<1x128xf32, #tpu.memory_space<vmem>>, %arg9: memref<16x128xf32, #tpu.memory_space<vmem>>, %arg10: memref<16x128xbf16, #tpu.memory_space<vmem>>) attributes {dimension_semantics = [#tpu.dimension_semantics<parallel>, #tpu.dimension_semantics<arbitrary>], iteration_bounds = array<i64: 1, 1>, scalar_prefetch = 0 : i64, scratch_operands = 1 : i64, tpu.core_type = #tpu.core_type<tc>, window_params = [{transform_indices = @transform_0, window_bounds = array<i64: 16, 128>}, {pipeline_mode = #tpu.pipeline_mode<synchronous>, transform_indices = @transform_1, window_bounds = array<i64: 128, 128>}, {pipeline_mode = #tpu.pipeline_mode<synchronous>, transform_indices = @transform_2, window_bounds = array<i64: 1, 128>}, {pipeline_mode = #tpu.pipeline_mode<synchronous>, transform_indices = @transform_3, window_bounds = array<i64: 128, 128>}, {pipeline_mode = #tpu.pipeline_mode<synchronous>, transform_indices = @transform_4, window_bounds = array<i64: 1, 128>}, {pipeline_mode = #tpu.pipeline_mode<synchronous>, transform_indices = @transform_5, window_bounds = array<i64: 128, 128>}, {pipeline_mode = #tpu.pipeline_mode<synchronous>, transform_indices = @transform_6, window_bounds = array<i64: 1, 128>}, {transform_indices = @transform_7, window_bounds = array<i64: 16, 128>}]} {
    %c0_i32 = arith.constant 0 : i32
    %0 = arith.cmpi eq, %arg1, %c0_i32 : i32
    %1 = arith.extui %0 : i1 to i32
    %c0_i32_0 = arith.constant 0 : i32
    %2 = arith.cmpi ne, %1, %c0_i32_0 : i32
    scf.if %2 {
      %c0_9 = arith.constant 0 : index
      %c0_10 = arith.constant 0 : index
      %15 = vector.load %arg2[%c0_9, %c0_10] : memref<16x128xbf16, #tpu.memory_space<vmem>>, vector<16x128xbf16>
      %c0_11 = arith.constant 0 : index
      %c0_12 = arith.constant 0 : index
      %16 = vector.load %arg3[%c0_11, %c0_12] : memref<128x128xbf16, #tpu.memory_space<vmem>>, vector<128x128xbf16>
      %cst_13 = arith.constant dense<0.000000e+00> : vector<16x128xf32>
      %17 = tpu.matmul %15, %16, %cst_13 {dimension_numbers = #tpu.dot_dimension_numbers<[1], [0], [0], [1], [0, 0, 1, 1], [], []>} : vector<16x128xbf16>, vector<128x128xbf16>, vector<16x128xf32> -> vector<16x128xf32>
      %c0_14 = arith.constant 0 : index
      %c0_15 = arith.constant 0 : index
      %18 = vector.load %arg4[%c0_14, %c0_15] : memref<1x128xf32, #tpu.memory_space<vmem>>, vector<1x128xf32>
      %19 = vector.broadcast %18 : vector<1x128xf32> to vector<16x128xf32>
      %20 = arith.addf %17, %19 : vector<16x128xf32>
      %cst_16 = arith.constant 0.000000e+00 : f32
      %21 = vector.broadcast %cst_16 : f32 to vector<16x128xf32>
      %22 = arith.maximumf %20, %21 : vector<16x128xf32>
      %23 = arith.truncf %22 : vector<16x128xf32> to vector<16x128xbf16>
      %c0_17 = arith.constant 0 : index
      %c0_18 = arith.constant 0 : index
      %24 = vector.load %arg5[%c0_17, %c0_18] : memref<128x128xbf16, #tpu.memory_space<vmem>>, vector<128x128xbf16>
      %cst_19 = arith.constant dense<0.000000e+00> : vector<16x128xf32>
      %25 = tpu.matmul %23, %24, %cst_19 {dimension_numbers = #tpu.dot_dimension_numbers<[1], [0], [0], [1], [0, 0, 1, 1], [], []>} : vector<16x128xbf16>, vector<128x128xbf16>, vector<16x128xf32> -> vector<16x128xf32>
      %c0_20 = arith.constant 0 : index
      %c0_21 = arith.constant 0 : index
      %26 = vector.load %arg6[%c0_20, %c0_21] : memref<1x128xf32, #tpu.memory_space<vmem>>, vector<1x128xf32>
      %27 = vector.broadcast %26 : vector<1x128xf32> to vector<16x128xf32>
      %28 = arith.addf %25, %27 : vector<16x128xf32>
      %cst_22 = arith.constant 0.000000e+00 : f32
      %29 = vector.broadcast %cst_22 : f32 to vector<16x128xf32>
      %30 = arith.maximumf %28, %29 : vector<16x128xf32>
      %31 = arith.truncf %30 : vector<16x128xf32> to vector<16x128xbf16>
      %c0_23 = arith.constant 0 : index
      %c0_24 = arith.constant 0 : index
      %32 = vector.load %arg10[%c0_23, %c0_24] : memref<16x128xbf16, #tpu.memory_space<vmem>>, vector<16x128xbf16>
      tpu.vector_store %arg10[%c0_23, %c0_24], %31 {strides = array<i32>} : memref<16x128xbf16, #tpu.memory_space<vmem>>, vector<16x128xbf16>,
    } else {
    }
    %c0 = arith.constant 0 : index
    %c0_1 = arith.constant 0 : index
    %3 = vector.load %arg10[%c0, %c0_1] : memref<16x128xbf16, #tpu.memory_space<vmem>>, vector<16x128xbf16>
    %c0_2 = arith.constant 0 : index
    %c0_3 = arith.constant 0 : index
    %4 = vector.load %arg7[%c0_2, %c0_3] : memref<128x128xbf16, #tpu.memory_space<vmem>>, vector<128x128xbf16>
    %cst = arith.constant dense<0.000000e+00> : vector<16x128xf32>
    %5 = tpu.matmul %3, %4, %cst {dimension_numbers = #tpu.dot_dimension_numbers<[1], [0], [0], [1], [0, 0, 1, 1], [], []>} : vector<16x128xbf16>, vector<128x128xbf16>, vector<16x128xf32> -> vector<16x128xf32>
    %c0_4 = arith.constant 0 : index
    %c0_5 = arith.constant 0 : index
    %6 = vector.load %arg8[%c0_4, %c0_5] : memref<1x128xf32, #tpu.memory_space<vmem>>, vector<1x128xf32>
    %7 = vector.broadcast %6 : vector<1x128xf32> to vector<16x128xf32>
    %8 = arith.addf %5, %7 : vector<16x128xf32>
    %9 = arith.negf %8 : vector<16x128xf32>
    %10 = math.exp %9 : vector<16x128xf32>
    %cst_6 = arith.constant 1.000000e+00 : f32
    %11 = vector.broadcast %cst_6 : f32 to vector<16x128xf32>
    %12 = arith.addf %11, %10 : vector<16x128xf32>
    %13 = arith.divf %11, %12 : vector<16x128xf32>
    %c0_7 = arith.constant 0 : index
    %c0_8 = arith.constant 0 : index
    %14 = vector.load %arg9[%c0_7, %c0_8] : memref<16x128xf32, #tpu.memory_space<vmem>>, vector<16x128xf32>
    tpu.vector_store %arg9[%c0_7, %c0_8], %13 {strides = array<i32>} : memref<16x128xf32, #tpu.memory_space<vmem>>, vector<16x128xf32>,
    return
  }
  func.func @transform_0(%arg0: i32, %arg1: i32) -> (i32, i32) {
    %c0_i32 = arith.constant 0 : i32
    %c0_i32_0 = arith.constant 0 : i32
    return %arg0, %c0_i32 : i32, i32
  }
  func.func @transform_1(%arg0: i32, %arg1: i32) -> (i32, i32) {
    %c0_i32 = arith.constant 0 : i32
    %c0_i32_0 = arith.constant 0 : i32
    %c0_i32_1 = arith.constant 0 : i32
    return %c0_i32, %c0_i32_0 : i32, i32
  }
  func.func @transform_2(%arg0: i32, %arg1: i32) -> (i32, i32) {
    %c0_i32 = arith.constant 0 : i32
    %c0_i32_0 = arith.constant 0 : i32
    %c0_i32_1 = arith.constant 0 : i32
    return %c0_i32, %c0_i32_0 : i32, i32
  }
  func.func @transform_3(%arg0: i32, %arg1: i32) -> (i32, i32) {
    %c0_i32 = arith.constant 0 : i32
    %c0_i32_0 = arith.constant 0 : i32
    %c0_i32_1 = arith.constant 0 : i32
    return %c0_i32, %c0_i32_0 : i32, i32
  }
  func.func @transform_4(%arg0: i32, %arg1: i32) -> (i32, i32) {
    %c0_i32 = arith.constant 0 : i32
    %c0_i32_0 = arith.constant 0 : i32
    %c0_i32_1 = arith.constant 0 : i32
    return %c0_i32, %c0_i32_0 : i32, i32
  }
  func.func @transform_5(%arg0: i32, %arg1: i32) -> (i32, i32) {
    %c0_i32 = arith.constant 0 : i32
    %c0_i32_0 = arith.constant 0 : i32
    return %c0_i32, %arg1 : i32, i32
  }
  func.func @transform_6(%arg0: i32, %arg1: i32) -> (i32, i32) {
    %c0_i32 = arith.constant 0 : i32
    %c0_i32_0 = arith.constant 0 : i32
    return %c0_i32, %arg1 : i32, i32
  }
  func.func @transform_7(%arg0: i32, %arg1: i32) -> (i32, i32) {
    %c0_i32 = arith.constant 0 : i32
    return %arg0, %arg1 : i32, i32
  }
}

module attributes {stable_mosaic.version = 11 : i64} {
  func.func @decoder_kernel(%arg0: i32, %arg1: i32, %arg2: memref<16x128xbf16, #tpu.memory_space<vmem>>, %arg3: memref<128x128xbf16, #tpu.memory_space<vmem>>, %arg4: memref<1x128xf32, #tpu.memory_space<vmem>>, %arg5: memref<128x128xbf16, #tpu.memory_space<vmem>>, %arg6: memref<1x128xf32, #tpu.memory_space<vmem>>, %arg7: memref<128x128xbf16, #tpu.memory_space<vmem>>, %arg8: memref<1x128xf32, #tpu.memory_space<vmem>>, %arg9: memref<16x128xf32, #tpu.memory_space<vmem>>, %arg10: memref<16x128xbf16, #tpu.memory_space<vmem>>) attributes {dimension_semantics = [#tpu.dimension_semantics<parallel>, #tpu.dimension_semantics<arbitrary>], iteration_bounds = array<i64: 1, 1>, scalar_prefetch = 0 : i64, scratch_operands = 1 : i64, tpu.core_type = #tpu.core_type<tc>, window_params = [{transform_indices = @transform_0, window_bounds = array<i64: 16, 128>}, {pipeline_mode = #tpu.pipeline_mode<synchronous>, transform_indices = @transform_1, window_bounds = array<i64: 128, 128>}, {pipeline_mode = #tpu.pipeline_mode<synchronous>, transform_indices = @transform_2, window_bounds = array<i64: 1, 128>}, {pipeline_mode = #tpu.pipeline_mode<synchronous>, transform_indices = @transform_3, window_bounds = array<i64: 128, 128>}, {pipeline_mode = #tpu.pipeline_mode<synchronous>, transform_indices = @transform_4, window_bounds = array<i64: 1, 128>}, {transform_indices = @transform_5, window_bounds = array<i64: 128, 128>}, {transform_indices = @transform_6, window_bounds = array<i64: 1, 128>}, {transform_indices = @transform_7, window_bounds = array<i64: 16, 128>}]} {
    %c0_i32 = arith.constant 0 : i32
    %0 = arith.cmpi eq, %arg1, %c0_i32 : i32
    %1 = arith.extui %0 : i1 to i32
    %c0_i32_0 = arith.constant 0 : i32
    %2 = arith.cmpi ne, %1, %c0_i32_0 : i32
    scf.if %2 {
      %c0_9 = arith.constant 0 : index
      %c0_10 = arith.constant 0 : index
      %15 = vector.load %arg2[%c0_9, %c0_10] : memref<16x128xbf16, #tpu.memory_space<vmem>>, vector<16x128xbf16>
      %c0_11 = arith.constant 0 : index
      %c0_12 = arith.constant 0 : index
      %16 = vector.load %arg3[%c0_11, %c0_12] : memref<128x128xbf16, #tpu.memory_space<vmem>>, vector<128x128xbf16>
      %cst_13 = arith.constant dense<0.000000e+00> : vector<16x128xf32>
      %17 = tpu.matmul %15, %16, %cst_13 {dimension_numbers = #tpu.dot_dimension_numbers<[1], [0], [0], [1], [0, 0, 1, 1], [], []>} : vector<16x128xbf16>, vector<128x128xbf16>, vector<16x128xf32> -> vector<16x128xf32>
      %c0_14 = arith.constant 0 : index
      %c0_15 = arith.constant 0 : index
      %18 = vector.load %arg4[%c0_14, %c0_15] : memref<1x128xf32, #tpu.memory_space<vmem>>, vector<1x128xf32>
      %19 = vector.broadcast %18 : vector<1x128xf32> to vector<16x128xf32>
      %20 = arith.addf %17, %19 : vector<16x128xf32>
      %cst_16 = arith.constant 0.000000e+00 : f32
      %21 = vector.broadcast %cst_16 : f32 to vector<16x128xf32>
      %22 = arith.maximumf %20, %21 : vector<16x128xf32>
      %23 = arith.truncf %22 : vector<16x128xf32> to vector<16x128xbf16>
      %c0_17 = arith.constant 0 : index
      %c0_18 = arith.constant 0 : index
      %24 = vector.load %arg5[%c0_17, %c0_18] : memref<128x128xbf16, #tpu.memory_space<vmem>>, vector<128x128xbf16>
      %cst_19 = arith.constant dense<0.000000e+00> : vector<16x128xf32>
      %25 = tpu.matmul %23, %24, %cst_19 {dimension_numbers = #tpu.dot_dimension_numbers<[1], [0], [0], [1], [0, 0, 1, 1], [], []>} : vector<16x128xbf16>, vector<128x128xbf16>, vector<16x128xf32> -> vector<16x128xf32>
      %c0_20 = arith.constant 0 : index
      %c0_21 = arith.constant 0 : index
      %26 = vector.load %arg6[%c0_20, %c0_21] : memref<1x128xf32, #tpu.memory_space<vmem>>, vector<1x128xf32>
      %27 = vector.broadcast %26 : vector<1x128xf32> to vector<16x128xf32>
      %28 = arith.addf %25, %27 : vector<16x128xf32>
      %cst_22 = arith.constant 0.000000e+00 : f32
      %29 = vector.broadcast %cst_22 : f32 to vector<16x128xf32>
      %30 = arith.maximumf %28, %29 : vector<16x128xf32>
      %31 = arith.truncf %30 : vector<16x128xf32> to vector<16x128xbf16>
      %c0_23 = arith.constant 0 : index
      %c0_24 = arith.constant 0 : index
      %32 = vector.load %arg10[%c0_23, %c0_24] : memref<16x128xbf16, #tpu.memory_space<vmem>>, vector<16x128xbf16>
      tpu.vector_store %arg10[%c0_23, %c0_24], %31 {strides = array<i32>} : memref<16x128xbf16, #tpu.memory_space<vmem>>, vector<16x128xbf16>,
    } else {
    }
    %c0 = arith.constant 0 : index
    %c0_1 = arith.constant 0 : index
    %3 = vector.load %arg10[%c0, %c0_1] : memref<16x128xbf16, #tpu.memory_space<vmem>>, vector<16x128xbf16>
    %c0_2 = arith.constant 0 : index
    %c0_3 = arith.constant 0 : index
    %4 = vector.load %arg7[%c0_2, %c0_3] : memref<128x128xbf16, #tpu.memory_space<vmem>>, vector<128x128xbf16>
    %cst = arith.constant dense<0.000000e+00> : vector<16x128xf32>
    %5 = tpu.matmul %3, %4, %cst {dimension_numbers = #tpu.dot_dimension_numbers<[1], [0], [0], [1], [0, 0, 1, 1], [], []>} : vector<16x128xbf16>, vector<128x128xbf16>, vector<16x128xf32> -> vector<16x128xf32>
    %c0_4 = arith.constant 0 : index
    %c0_5 = arith.constant 0 : index
    %6 = vector.load %arg8[%c0_4, %c0_5] : memref<1x128xf32, #tpu.memory_space<vmem>>, vector<1x128xf32>
    %7 = vector.broadcast %6 : vector<1x128xf32> to vector<16x128xf32>
    %8 = arith.addf %5, %7 : vector<16x128xf32>
    %9 = arith.negf %8 : vector<16x128xf32>
    %10 = math.exp %9 : vector<16x128xf32>
    %cst_6 = arith.constant 1.000000e+00 : f32
    %11 = vector.broadcast %cst_6 : f32 to vector<16x128xf32>
    %12 = arith.addf %11, %10 : vector<16x128xf32>
    %13 = arith.divf %11, %12 : vector<16x128xf32>
    %c0_7 = arith.constant 0 : index
    %c0_8 = arith.constant 0 : index
    %14 = vector.load %arg9[%c0_7, %c0_8] : memref<16x128xf32, #tpu.memory_space<vmem>>, vector<16x128xf32>
    tpu.vector_store %arg9[%c0_7, %c0_8], %13 {strides = array<i32>} : memref<16x128xf32, #tpu.memory_space<vmem>>, vector<16x128xf32>,
    return
  }
  func.func @transform_0(%arg0: i32, %arg1: i32) -> (i32, i32) {
    %c0_i32 = arith.constant 0 : i32
    %c0_i32_0 = arith.constant 0 : i32
    return %arg0, %c0_i32 : i32, i32
  }
  func.func @transform_1(%arg0: i32, %arg1: i32) -> (i32, i32) {
    %c0_i32 = arith.constant 0 : i32
    %c0_i32_0 = arith.constant 0 : i32
    %c0_i32_1 = arith.constant 0 : i32
    return %c0_i32, %c0_i32_0 : i32, i32
  }
  func.func @transform_2(%arg0: i32, %arg1: i32) -> (i32, i32) {
    %c0_i32 = arith.constant 0 : i32
    %c0_i32_0 = arith.constant 0 : i32
    %c0_i32_1 = arith.constant 0 : i32
    return %c0_i32, %c0_i32_0 : i32, i32
  }
  func.func @transform_3(%arg0: i32, %arg1: i32) -> (i32, i32) {
    %c0_i32 = arith.constant 0 : i32
    %c0_i32_0 = arith.constant 0 : i32
    %c0_i32_1 = arith.constant 0 : i32
    return %c0_i32, %c0_i32_0 : i32, i32
  }
  func.func @transform_4(%arg0: i32, %arg1: i32) -> (i32, i32) {
    %c0_i32 = arith.constant 0 : i32
    %c0_i32_0 = arith.constant 0 : i32
    %c0_i32_1 = arith.constant 0 : i32
    return %c0_i32, %c0_i32_0 : i32, i32
  }
  func.func @transform_5(%arg0: i32, %arg1: i32) -> (i32, i32) {
    %c0_i32 = arith.constant 0 : i32
    %c0_i32_0 = arith.constant 0 : i32
    return %c0_i32, %arg1 : i32, i32
  }
  func.func @transform_6(%arg0: i32, %arg1: i32) -> (i32, i32) {
    %c0_i32 = arith.constant 0 : i32
    %c0_i32_0 = arith.constant 0 : i32
    return %c0_i32, %arg1 : i32, i32
  }
  func.func @transform_7(%arg0: i32, %arg1: i32) -> (i32, i32) {
    %c0_i32 = arith.constant 0 : i32
    return %arg0, %arg1 : i32, i32
  }
}

</mosaic_0001>

<bundles_post_ra>
// kernel: tpu_custom_call.1
= control target key start
LH: loop header
LB: loop body
LE: loop exit
PB: predicated region body
PF: predicated region fallthrough
CT: control target
= control target key end

     0   :  { %12 = vsyncpa [#allocation4], 0  ;;  %s884_s0 = inlined_call_operand.hbm [shape: bf16[16,128], index: 0, kind: input, shape index: {}]   ;;  %s885_s1 = inlined_call_operand.hbm [shape: bf16[128,128], index: 1, kind: input, shape index: {}]   ;;  %s886_s2 = inlined_call_operand.vmem [shape: f32[1,128], index: 2, kind: input, shape index: {}]   ;;  %s887_s3 = inlined_call_operand.hbm [shape: bf16[128,128], index: 3, kind: input, shape index: {}]   ;;  %s888_s4 = inlined_call_operand.vmem [shape: f32[1,128], index: 4, kind: input, shape index: {}]   ;;  %s889_s5 = inlined_call_operand.hbm [shape: bf16[128,128], index: 5, kind: input, shape index: {}]   ;;  %s890_s6 = inlined_call_operand.vmem [shape: f32[1,128], index: 6, kind: input, shape index: {}]   ;;  %s891_s7 = inlined_call_operand.hbm [shape: f32[16,128], index: 7, kind: output, shape index: {}]  }
   0x1   :  { %13 = vsyncpa [#allocation7], 0 }
   0x2   :  { %14 = vsyncpa [#allocation10], 0 }
   0x3   :  { %15 = vsyncpa [#allocation5], 0  ;;  %s767_s24 = smov [#allocation6]   ;;  %s768_s26 = smov [#allocation3]  }
   0x4   :  { %s33_s25 = sshll.u32 %s767_s24, 4  ;;  %s21_s27 = sshll.u32 %s768_s26, 4  ;;  %s34_s25 = int_to_ptr.vmem [resolvable:$true] %s33_s25  ;;  %s22_s27 = int_to_ptr.vmem [resolvable:$true] %s21_s27 }
   0x5   :  { %s667_s28 = scalar_lea.vmem %s34_s25, 1024  ;;  %p672_p1 = scmp.lt.s32.totalorder %s34_s25, %s34_s25 }
   0x6   :  { %p668_p0 = scmp.ne.s32.totalorder %s34_s25, %s667_s28  ;;  %p673_p2 = scmp.lt.s32.totalorder %s667_s28, %s667_s28 }
   0x8   :  { %p674_p3 = por %p673_p2, %p672_p1 }
   0xa   :  { %p675_p4 = pnand %p674_p3, %p668_p0 }
   0xc   :  { %678 = shalt.err (!%p675_p4)
}
   0xd   :  { %s769_s29 = smov 64   ;;  %s770_s30 = smov 4  }
   0xe   :  { %39 = dma.hbm_to_vmem [thread:$0]  %s885_s1, 1024, %s34_s25, [#allocation7], %s769_s29, %s769_s29, %s770_s30  }
   0xf   :  { %s687_s10 = scalar_lea.vmem %s22_s27, 128  ;;  %p692_p6 = scmp.lt.s32.totalorder %s22_s27, %s22_s27 }
  0x10   :  { %p688_p5 = scmp.ne.s32.totalorder %s22_s27, %s687_s10  ;;  %p693_p7 = scmp.lt.s32.totalorder %s687_s10, %s687_s10 }
  0x12   :  { %p694_p8 = por %p693_p7, %p692_p6 }
  0x14   :  { %p695_p9 = pnand %p694_p8, %p688_p5 }
  0x16   :  { %698 = shalt.err (!%p695_p9)
}
  0x17   :  { %27 = dma.hbm_to_vmem [thread:$0]  %s884_s0, 128, %s22_s27, [#allocation4], %s769_s29, %s769_s29, %s770_s30  }
  0x18   :  { %s771_s13 = smov [#allocation8]   ;;  %s772_s15 = smov [#allocation9]  }
  0x19   :  { %s47_s14 = sshll.u32 %s771_s13, 4  ;;  %s61_s16 = sshll.u32 %s772_s15, 4  ;;  %s48_s14 = int_to_ptr.vmem [resolvable:$true] %s47_s14  ;;  %s62_s16 = int_to_ptr.vmem [resolvable:$true] %s61_s16 }
  0x1a   :  { %s707_s1 = scalar_lea.vmem %s48_s14, 1024  ;;  %p712_p11 = scmp.lt.s32.totalorder %s48_s14, %s48_s14 }
  0x1b   :  { %p708_p10 = scmp.ne.s32.totalorder %s48_s14, %s707_s1  ;;  %p713_p12 = scmp.lt.s32.totalorder %s707_s1, %s707_s1 }
  0x1d   :  { %p714_p13 = por %p713_p12, %p712_p11 }
  0x1f   :  { %p715_p0 = pnand %p714_p13, %p708_p10 }
  0x21   :  { %718 = shalt.err (!%p715_p0)
}
  0x22   :  { %53 = dma.hbm_to_vmem [thread:$0]  %s887_s3, 1024, %s48_s14, [#allocation7], %s769_s29, %s769_s29, %s770_s30  }
  0x23   :  { %s727_s0 = scalar_lea.vmem %s62_s16, 1024  ;;  %p732_p2 = scmp.lt.s32.totalorder %s62_s16, %s62_s16 }
  0x24   :  { %p728_p1 = scmp.ne.s32.totalorder %s62_s16, %s727_s0  ;;  %p733_p3 = scmp.lt.s32.totalorder %s727_s0, %s727_s0 }
  0x26   :  { %p734_p4 = por %p733_p3, %p732_p2 }
  0x28   :  { %p735_p5 = pnand %p734_p4, %p728_p1 }
  0x2a   :  { %738 = shalt.err (!%p735_p5)
}
  0x2b   :  { %67 = dma.hbm_to_vmem [thread:$0]  %s889_s5, 1024, %s62_s16, [#allocation10], %s769_s29, %s769_s29, %s770_s30  }
  0x2c   :  { %759 = dma.done.wait [#allocation4], 128  }
  0x2d   :  { %760 = vsyncadd [#allocation4], 4294967168 }
  0x2e   :  { %761 = dma.done.wait [#allocation7], 2048  }
  0x2f   :  { %762 = vsyncadd [#allocation7], 4294965248 }
  0x30   :  { %763 = dma.done.wait [#allocation10], 1024  }
  0x31   :  { %764 = vsyncadd [#allocation10], 4294966272  ;;  %v773_v0 = vmov 0.0   ;;  %vm774_vm0 = vmmov 0   ;;  %v625_v1 = vld [vmem:[#allocation6 + $0x38] sm:$0xff]   ;;  %v626_v2 = vld [vmem:[#allocation6 + $0x30] sm:$0xff]  }
  0x32   :  { %554 = vmatprep.subr.bf16.mxu0 %v773_v0  ;;  %570 = vmatprep.mubr.msk.bf16.mxu0 %vm774_vm0, %v773_v0  ;;  %v627_v3 = vld [vmem:[#allocation6 + $0x28] sm:$0xff]   ;;  %v634_v4 = vld [vmem:[#allocation8 + $0x38] sm:$0xff]   ;;  %v628_v5 = vld [vmem:[#allocation6 + $0x20] sm:$0xff]  }
  0x33   :  { %574 = vmatprep.subr.bf16.mxu1 %v773_v0  ;;  %590 = vmatprep.mubr.msk.bf16.mxu1 %vm774_vm0, %v773_v0  ;;  %v635_v6 = vld [vmem:[#allocation8 + $0x30] sm:$0xff]   ;;  %v629_v7 = vld [vmem:[#allocation6 + $0x18] sm:$0xff]   ;;  %v636_v8 = vld [vmem:[#allocation8 + $0x28] sm:$0xff]  }
  0x34   :  { %555 = vmatpush3.bf16.msra.mxu0 %v625_v1  ;;  %575 = vmatpush3.bf16.msra.mxu1 %v634_v4  ;;  %v630_v9 = vld [vmem:[#allocation6 + $0x10] sm:$0xff]   ;;  %v637_v10 = vld [vmem:[#allocation8 + $0x20] sm:$0xff]   ;;  %v631_v11 = vld [vmem:[#allocation6 + $0x8] sm:$0xff]  }
  0x35   :  { %556 = vmatprep.subr.bf16.mxu0 %v773_v0  ;;  %576 = vmatprep.subr.bf16.mxu1 %v773_v0  ;;  %v638_v12 = vld [vmem:[#allocation8 + $0x18] sm:$0xff]   ;;  %v632_v13 = vld [vmem:[#allocation6] sm:$0xff]   ;;  %v639_v15 = vld [vmem:[#allocation8 + $0x10] sm:$0xff]  }
  0x36   :  { %v633_v14 = vld [vmem:[#allocation3] sm:$0xff]   ;;  %v640_v16 = vld [vmem:[#allocation8 + $0x8] sm:$0xff]   ;;  %v641_v17 = vld [vmem:[#allocation8] sm:$0xff]  }
  0x37   :  { %v642_v18 = vld [vmem:[#allocation9 + $0x38] sm:$0xff]   ;;  %v643_v19 = vld [vmem:[#allocation9 + $0x30] sm:$0xff]   ;;  %v644_v20 = vld [vmem:[#allocation9 + $0x28] sm:$0xff]  }
  0x38   :  { %557 = vmatpush3.bf16.msra.mxu0 %v626_v2  ;;  %577 = vmatpush3.bf16.msra.mxu1 %v635_v6  ;;  %v487_v21 = vld [vmem:[%s886_s2] ss:$0 sm:$0xff]  ;;  %v645_v31 = vld [vmem:[#allocation9 + $0x20] sm:$0xff]   ;;  %v646_v32 = vld [vmem:[#allocation9 + $0x18] sm:$0xff]  }
  0x39   :  { %558 = vmatprep.subr.bf16.mxu0 %v773_v0  ;;  %578 = vmatprep.subr.bf16.mxu1 %v773_v0  ;;  %v647_v33 = vld [vmem:[#allocation9 + $0x10] sm:$0xff]   ;;  %v648_v34 = vld [vmem:[#allocation9 + $0x8] sm:$0xff]   ;;  %v649_v35 = vld [vmem:[#allocation9] sm:$0xff]  }
  0x3a   :  { %v497_v36 = vld [vmem:[%s888_s4] ss:$0 sm:$0xff]  ;;  %s775_s4 = smov [#allocation11]  }
  0x3b   :  { %v508_v47 = vld [vmem:[%s890_s6] ss:$0 sm:$0xff]  ;;  %s473_s24 = sshll.u32 %s775_s4, 4  ;;  %s474_s24 = int_to_ptr.vmem [resolvable:$true] %s473_s24 }
  0x3c   :  { %559 = vmatpush3.bf16.msra.mxu0 %v627_v3  ;;  %579 = vmatpush3.bf16.msra.mxu1 %v636_v8  ;;  %s739_s6 = scalar_lea.vmem %s474_s24, 256  ;;  %p744_p7 = scmp.lt.s32.totalorder %s474_s24, %s474_s24 }
  0x3d   :  { %560 = vmatprep.subr.bf16.mxu0 %v773_v0  ;;  %580 = vmatprep.subr.bf16.mxu1 %v773_v0  ;;  %p740_p6 = scmp.ne.s32.totalorder %s474_s24, %s739_s6  ;;  %p745_p8 = scmp.lt.s32.totalorder %s739_s6, %s739_s6 }
  0x3f   :  { %p746_p9 = por %p745_p8, %p744_p7 }
  0x40   :  { %561 = vmatpush3.bf16.msra.mxu0 %v628_v5  ;;  %581 = vmatpush3.bf16.msra.mxu1 %v637_v10 }
  0x41   :  { %562 = vmatprep.subr.bf16.mxu0 %v773_v0  ;;  %582 = vmatprep.subr.bf16.mxu1 %v773_v0  ;;  %p747_p10 = pnand %p746_p9, %p740_p6 }
  0x44   :  { %563 = vmatpush3.bf16.msra.mxu0 %v629_v7  ;;  %583 = vmatpush3.bf16.msra.mxu1 %v638_v12 }
  0x45   :  { %564 = vmatprep.subr.bf16.mxu0 %v773_v0  ;;  %584 = vmatprep.subr.bf16.mxu1 %v773_v0 }
  0x48   :  { %565 = vmatpush3.bf16.msra.mxu0 %v630_v9  ;;  %585 = vmatpush3.bf16.msra.mxu1 %v639_v15 }
  0x49   :  { %566 = vmatprep.subr.bf16.mxu0 %v773_v0  ;;  %586 = vmatprep.subr.bf16.mxu1 %v773_v0 }
  0x4c   :  { %567 = vmatpush3.bf16.msra.mxu0 %v631_v11  ;;  %587 = vmatpush3.bf16.msra.mxu1 %v640_v16 }
  0x4d   :  { %568 = vmatprep.subr.bf16.mxu0 %v773_v0  ;;  %588 = vmatprep.subr.bf16.mxu1 %v773_v0 }
  0x50   :  { %569 = vmatpush3.bf16.msra.mxu0 %v632_v13  ;;  %589 = vmatpush3.bf16.msra.mxu1 %v641_v17 }
  0x51   :  { %594 = vmatprep.subr.bf16.mxu0 %v773_v0 }
  0x53   :  { %571 = vmatmul.mubr.bf16.vlgmr.msra.gmra.mxu0 %v633_v14 }
  0x54   :  { %610 = vmatprep.mubr.msk.bf16.mxu0 %vm774_vm0, %v773_v0  ;;  %595 = vmatpush3.bf16.msra.mxu0 %v642_v18 }
  0x55   :  { %596 = vmatprep.subr.bf16.mxu0 %v773_v0 }
  0x58   :  { %597 = vmatpush3.bf16.msra.mxu0 %v643_v19 }
  0x59   :  { %598 = vmatprep.subr.bf16.mxu0 %v773_v0 }
  0x5c   :  { %599 = vmatpush3.bf16.msra.mxu0 %v644_v20 }
  0x5d   :  { %600 = vmatprep.subr.bf16.mxu0 %v773_v0 }
  0x60   :  { %601 = vmatpush3.bf16.msra.mxu0 %v645_v31 }
  0x61   :  { %602 = vmatprep.subr.bf16.mxu0 %v773_v0 }
  0x64   :  { %603 = vmatpush3.bf16.msra.mxu0 %v646_v32 }
  0x65   :  { %604 = vmatprep.subr.bf16.mxu0 %v773_v0 }
  0x68   :  { %605 = vmatpush3.bf16.msra.mxu0 %v647_v33 }
  0x69   :  { %606 = vmatprep.subr.bf16.mxu0 %v773_v0 }
  0x6c   :  { %607 = vmatpush3.bf16.msra.mxu0 %v648_v34 }
  0x6d   :  { %608 = vmatprep.subr.bf16.mxu0 %v773_v0 }
  0x70   :  { %609 = vmatpush3.bf16.msra.mxu0 %v649_v35 }
 0x113   :  { %v200_v22 = vpop.f32.mrf.mxu0 }
 0x114   :  { %v201_v24 = vadd.f32 %v487_v21, %v200_v22 }
 0x115   :  { %v572_v23 = vpop.f32.mrf.mxu0 }
 0x116   :  { %v207_v28 = vmax.f32 %v201_v24, 0.0 }
 0x117   :  { %v203_v25 = vpop.f32.mrf.mxu0 }
 0x118   :  { %v204_v26 = vadd.f32 %v487_v21, %v203_v25 }
 0x119   :  { %v573_v27 = vpop.f32.mrf.mxu0 }
 0x11a   :  { %v208_v29 = vmax.f32 %v204_v26, 0.0 }
 0x11c   :  { %v209_v30 = vpack.c.bf16 %v208_v29, %v207_v28 }
 0x11e   :  { %591 = vmatmul.mubr.bf16.vlgmr.msra.gmra.mxu1 %v209_v30 }
 0x1de   :  { %v315_v37 = vpop.f32.mrf.mxu1 }
 0x1df   :  { %v316_v39 = vadd.f32 %v497_v36, %v315_v37 }
 0x1e0   :  { %v592_v38 = vpop.f32.mrf.mxu1 }
 0x1e1   :  { %v322_v43 = vmax.f32 %v316_v39, 0.0 }
 0x1e2   :  { %v318_v40 = vpop.f32.mrf.mxu1 }
 0x1e3   :  { %v319_v41 = vadd.f32 %v497_v36, %v318_v40 }
 0x1e4   :  { %v593_v42 = vpop.f32.mrf.mxu1 }
 0x1e5   :  { %v323_v44 = vmax.f32 %v319_v41, 0.0 }
 0x1e7   :  { %v525_v45 = vpack.c.bf16 %v323_v44, %v322_v43 }
 0x1e9   :  { %526 = vst [vmem:[#allocation2] sm:$0xff] %v525_v45  }
 0x1f0   :  { %v650_v46 = vld [vmem:[#allocation2] sm:$0xff]  }
 0x1f1   :  { %611 = vmatmul.mubr.bf16.vlgmr.msra.gmra.mxu0 %v650_v46 }
 0x2b1   :  { %v447_v48 = vpop.f32.mrf.mxu0 }
 0x2b2   :  { %v448_v49 = vadd.f32 %v508_v47, %v447_v48 }
 0x2b3   :  { %v612_v50 = vpop.f32.mrf.mxu0 }
 0x2b4   :  { %v518_v51 = vmul.f32 -1.442695, %v448_v49 }
 0x2b5   :  { %v450_v52 = vpop.f32.mrf.mxu0 }
 0x2b6   :  { %651 = vpow2.f32 %v518_v51  ;;  %v451_v53 = vadd.f32 %v508_v47, %v450_v52 }
 0x2b7   :  { %v613_v54 = vpop.f32.mrf.mxu0 }
 0x2b8   :  { %v519_v55 = vmul.f32 -1.442695, %v451_v53 }
 0x2ba   :  { %653 = vpow2.f32 %v519_v55 }
 0x2c3   :  { %v652_v56 = vpop.eup %651 }
 0x2c4   :  { %v460_v57 = vadd.f32 1.0, %v652_v56 }
 0x2c6   :  { %655 = vrcp.f32 %v460_v57 }
 0x2c7   :  { %v654_v58 = vpop.eup %653 }
 0x2c8   :  { %v461_v59 = vadd.f32 1.0, %v654_v58 }
 0x2ca   :  { %657 = vrcp.f32 %v461_v59 }
 0x2d3   :  { %v656_v60 = vpop.eup %655 }
 0x2d4   :  { %466 = vst [vmem:[#allocation11] sm:$0xff] %v656_v60 }
 0x2d7   :  { %v658_v61 = vpop.eup %657 }
 0x2d8   :  { %467 = vst [vmem:[#allocation11 + $0x8] sm:$0xff] %v658_v61 }
 0x2d9   :  { %750 = shalt.err (!%p747_p10)
}
 0x2da   :  { %s776_s25 = smov 128   ;;  %s777_s26 = smov 8  }
 0x2db   :  { %479 = dma.vmem_to_hbm [thread:$0]  %s474_s24, 256, %s891_s7, [#allocation5], %s776_s25, %s776_s25, %s777_s26  }
 0x2dc   :  { %765 = dma.done.wait [#allocation5], 256  }
 0x2dd   :  { %766 = vsyncadd [#allocation5], 4294967040 }
 0x2de   :  { %483 = vsyncpa [#allocation4], 1 }
 0x2df   :  { %484 = vsyncpa [#allocation7], 1 }
 0x2e0   :  { %485 = vsyncpa [#allocation10], 1 }
 0x2e1   :  { %486 = vsyncpa [#allocation5], 1 }

// kernel: tpu_custom_call.1
= control target key start
LH: loop header
LB: loop body
LE: loop exit
PB: predicated region body
PF: predicated region fallthrough
CT: control target
= control target key end

     0   :  { %12 = vsyncpa [#allocation4], 0  ;;  %s884_s0 = inlined_call_operand.hbm [shape: bf16[16,128], index: 0, kind: input, shape index: {}]   ;;  %s885_s1 = inlined_call_operand.hbm [shape: bf16[128,128], index: 1, kind: input, shape index: {}]   ;;  %s886_s2 = inlined_call_operand.vmem [shape: f32[1,128], index: 2, kind: input, shape index: {}]   ;;  %s887_s3 = inlined_call_operand.hbm [shape: bf16[128,128], index: 3, kind: input, shape index: {}]   ;;  %s888_s4 = inlined_call_operand.vmem [shape: f32[1,128], index: 4, kind: input, shape index: {}]   ;;  %s889_s5 = inlined_call_operand.hbm [shape: bf16[128,128], index: 5, kind: input, shape index: {}]   ;;  %s890_s6 = inlined_call_operand.vmem [shape: f32[1,128], index: 6, kind: input, shape index: {}]   ;;  %s891_s7 = inlined_call_operand.hbm [shape: f32[16,128], index: 7, kind: output, shape index: {}]  }
   0x1   :  { %13 = vsyncpa [#allocation7], 0 }
   0x2   :  { %14 = vsyncpa [#allocation10], 0 }
   0x3   :  { %15 = vsyncpa [#allocation5], 0  ;;  %s767_s24 = smov [#allocation6]   ;;  %s768_s26 = smov [#allocation3]  }
   0x4   :  { %s33_s25 = sshll.u32 %s767_s24, 4  ;;  %s21_s27 = sshll.u32 %s768_s26, 4  ;;  %s34_s25 = int_to_ptr.vmem [resolvable:$true] %s33_s25  ;;  %s22_s27 = int_to_ptr.vmem [resolvable:$true] %s21_s27 }
   0x5   :  { %s667_s28 = scalar_lea.vmem %s34_s25, 1024  ;;  %p672_p1 = scmp.lt.s32.totalorder %s34_s25, %s34_s25 }
   0x6   :  { %p668_p0 = scmp.ne.s32.totalorder %s34_s25, %s667_s28  ;;  %p673_p2 = scmp.lt.s32.totalorder %s667_s28, %s667_s28 }
   0x8   :  { %p674_p3 = por %p673_p2, %p672_p1 }
   0xa   :  { %p675_p4 = pnand %p674_p3, %p668_p0 }
   0xc   :  { %678 = shalt.err (!%p675_p4)
}
   0xd   :  { %s769_s29 = smov 64   ;;  %s770_s30 = smov 4  }
   0xe   :  { %39 = dma.hbm_to_vmem [thread:$0]  %s885_s1, 1024, %s34_s25, [#allocation7], %s769_s29, %s769_s29, %s770_s30  }
   0xf   :  { %s687_s10 = scalar_lea.vmem %s22_s27, 128  ;;  %p692_p6 = scmp.lt.s32.totalorder %s22_s27, %s22_s27 }
  0x10   :  { %p688_p5 = scmp.ne.s32.totalorder %s22_s27, %s687_s10  ;;  %p693_p7 = scmp.lt.s32.totalorder %s687_s10, %s687_s10 }
  0x12   :  { %p694_p8 = por %p693_p7, %p692_p6 }
  0x14   :  { %p695_p9 = pnand %p694_p8, %p688_p5 }
  0x16   :  { %698 = shalt.err (!%p695_p9)
}
  0x17   :  { %27 = dma.hbm_to_vmem [thread:$0]  %s884_s0, 128, %s22_s27, [#allocation4], %s769_s29, %s769_s29, %s770_s30  }
  0x18   :  { %s771_s13 = smov [#allocation8]   ;;  %s772_s15 = smov [#allocation9]  }
  0x19   :  { %s47_s14 = sshll.u32 %s771_s13, 4  ;;  %s61_s16 = sshll.u32 %s772_s15, 4  ;;  %s48_s14 = int_to_ptr.vmem [resolvable:$true] %s47_s14  ;;  %s62_s16 = int_to_ptr.vmem [resolvable:$true] %s61_s16 }
  0x1a   :  { %s707_s1 = scalar_lea.vmem %s48_s14, 1024  ;;  %p712_p11 = scmp.lt.s32.totalorder %s48_s14, %s48_s14 }
  0x1b   :  { %p708_p10 = scmp.ne.s32.totalorder %s48_s14, %s707_s1  ;;  %p713_p12 = scmp.lt.s32.totalorder %s707_s1, %s707_s1 }
  0x1d   :  { %p714_p13 = por %p713_p12, %p712_p11 }
  0x1f   :  { %p715_p0 = pnand %p714_p13, %p708_p10 }
  0x21   :  { %718 = shalt.err (!%p715_p0)
}
  0x22   :  { %53 = dma.hbm_to_vmem [thread:$0]  %s887_s3, 1024, %s48_s14, [#allocation7], %s769_s29, %s769_s29, %s770_s30  }
  0x23   :  { %s727_s0 = scalar_lea.vmem %s62_s16, 1024  ;;  %p732_p2 = scmp.lt.s32.totalorder %s62_s16, %s62_s16 }
  0x24   :  { %p728_p1 = scmp.ne.s32.totalorder %s62_s16, %s727_s0  ;;  %p733_p3 = scmp.lt.s32.totalorder %s727_s0, %s727_s0 }
  0x26   :  { %p734_p4 = por %p733_p3, %p732_p2 }
  0x28   :  { %p735_p5 = pnand %p734_p4, %p728_p1 }
  0x2a   :  { %738 = shalt.err (!%p735_p5)
}
  0x2b   :  { %67 = dma.hbm_to_vmem [thread:$0]  %s889_s5, 1024, %s62_s16, [#allocation10], %s769_s29, %s769_s29, %s770_s30  }
  0x2c   :  { %759 = dma.done.wait [#allocation4], 128  }
  0x2d   :  { %760 = vsyncadd [#allocation4], 4294967168 }
  0x2e   :  { %761 = dma.done.wait [#allocation7], 2048  }
  0x2f   :  { %762 = vsyncadd [#allocation7], 4294965248 }
  0x30   :  { %763 = dma.done.wait [#allocation10], 1024  }
  0x31   :  { %764 = vsyncadd [#allocation10], 4294966272  ;;  %v773_v0 = vmov 0.0   ;;  %vm774_vm0 = vmmov 0   ;;  %v625_v1 = vld [vmem:[#allocation6 + $0x38] sm:$0xff]   ;;  %v626_v2 = vld [vmem:[#allocation6 + $0x30] sm:$0xff]  }
  0x32   :  { %554 = vmatprep.subr.bf16.mxu0 %v773_v0  ;;  %570 = vmatprep.mubr.msk.bf16.mxu0 %vm774_vm0, %v773_v0  ;;  %v627_v3 = vld [vmem:[#allocation6 + $0x28] sm:$0xff]   ;;  %v634_v4 = vld [vmem:[#allocation8 + $0x38] sm:$0xff]   ;;  %v628_v5 = vld [vmem:[#allocation6 + $0x20] sm:$0xff]  }
  0x33   :  { %574 = vmatprep.subr.bf16.mxu1 %v773_v0  ;;  %590 = vmatprep.mubr.msk.bf16.mxu1 %vm774_vm0, %v773_v0  ;;  %v635_v6 = vld [vmem:[#allocation8 + $0x30] sm:$0xff]   ;;  %v629_v7 = vld [vmem:[#allocation6 + $0x18] sm:$0xff]   ;;  %v636_v8 = vld [vmem:[#allocation8 + $0x28] sm:$0xff]  }
  0x34   :  { %555 = vmatpush3.bf16.msra.mxu0 %v625_v1  ;;  %575 = vmatpush3.bf16.msra.mxu1 %v634_v4  ;;  %v630_v9 = vld [vmem:[#allocation6 + $0x10] sm:$0xff]   ;;  %v637_v10 = vld [vmem:[#allocation8 + $0x20] sm:$0xff]   ;;  %v631_v11 = vld [vmem:[#allocation6 + $0x8] sm:$0xff]  }
  0x35   :  { %556 = vmatprep.subr.bf16.mxu0 %v773_v0  ;;  %576 = vmatprep.subr.bf16.mxu1 %v773_v0  ;;  %v638_v12 = vld [vmem:[#allocation8 + $0x18] sm:$0xff]   ;;  %v632_v13 = vld [vmem:[#allocation6] sm:$0xff]   ;;  %v639_v15 = vld [vmem:[#allocation8 + $0x10] sm:$0xff]  }
  0x36   :  { %v633_v14 = vld [vmem:[#allocation3] sm:$0xff]   ;;  %v640_v16 = vld [vmem:[#allocation8 + $0x8] sm:$0xff]   ;;  %v641_v17 = vld [vmem:[#allocation8] sm:$0xff]  }
  0x37   :  { %v642_v18 = vld [vmem:[#allocation9 + $0x38] sm:$0xff]   ;;  %v643_v19 = vld [vmem:[#allocation9 + $0x30] sm:$0xff]   ;;  %v644_v20 = vld [vmem:[#allocation9 + $0x28] sm:$0xff]  }
  0x38   :  { %557 = vmatpush3.bf16.msra.mxu0 %v626_v2  ;;  %577 = vmatpush3.bf16.msra.mxu1 %v635_v6  ;;  %v487_v21 = vld [vmem:[%s886_s2] ss:$0 sm:$0xff]  ;;  %v645_v31 = vld [vmem:[#allocation9 + $0x20] sm:$0xff]   ;;  %v646_v32 = vld [vmem:[#allocation9 + $0x18] sm:$0xff]  }
  0x39   :  { %558 = vmatprep.subr.bf16.mxu0 %v773_v0  ;;  %578 = vmatprep.subr.bf16.mxu1 %v773_v0  ;;  %v647_v33 = vld [vmem:[#allocation9 + $0x10] sm:$0xff]   ;;  %v648_v34 = vld [vmem:[#allocation9 + $0x8] sm:$0xff]   ;;  %v649_v35 = vld [vmem:[#allocation9] sm:$0xff]  }
  0x3a   :  { %v497_v36 = vld [vmem:[%s888_s4] ss:$0 sm:$0xff]  ;;  %s775_s4 = smov [#allocation11]  }
  0x3b   :  { %v508_v47 = vld [vmem:[%s890_s6] ss:$0 sm:$0xff]  ;;  %s473_s24 = sshll.u32 %s775_s4, 4  ;;  %s474_s24 = int_to_ptr.vmem [resolvable:$true] %s473_s24 }
  0x3c   :  { %559 = vmatpush3.bf16.msra.mxu0 %v627_v3  ;;  %579 = vmatpush3.bf16.msra.mxu1 %v636_v8  ;;  %s739_s6 = scalar_lea.vmem %s474_s24, 256  ;;  %p744_p7 = scmp.lt.s32.totalorder %s474_s24, %s474_s24 }
  0x3d   :  { %560 = vmatprep.subr.bf16.mxu0 %v773_v0  ;;  %580 = vmatprep.subr.bf16.mxu1 %v773_v0  ;;  %p740_p6 = scmp.ne.s32.totalorder %s474_s24, %s739_s6  ;;  %p745_p8 = scmp.lt.s32.totalorder %s739_s6, %s739_s6 }
  0x3f   :  { %p746_p9 = por %p745_p8, %p744_p7 }
  0x40   :  { %561 = vmatpush3.bf16.msra.mxu0 %v628_v5  ;;  %581 = vmatpush3.bf16.msra.mxu1 %v637_v10 }
  0x41   :  { %562 = vmatprep.subr.bf16.mxu0 %v773_v0  ;;  %582 = vmatprep.subr.bf16.mxu1 %v773_v0  ;;  %p747_p10 = pnand %p746_p9, %p740_p6 }
  0x44   :  { %563 = vmatpush3.bf16.msra.mxu0 %v629_v7  ;;  %583 = vmatpush3.bf16.msra.mxu1 %v638_v12 }
  0x45   :  { %564 = vmatprep.subr.bf16.mxu0 %v773_v0  ;;  %584 = vmatprep.subr.bf16.mxu1 %v773_v0 }
  0x48   :  { %565 = vmatpush3.bf16.msra.mxu0 %v630_v9  ;;  %585 = vmatpush3.bf16.msra.mxu1 %v639_v15 }
  0x49   :  { %566 = vmatprep.subr.bf16.mxu0 %v773_v0  ;;  %586 = vmatprep.subr.bf16.mxu1 %v773_v0 }
  0x4c   :  { %567 = vmatpush3.bf16.msra.mxu0 %v631_v11  ;;  %587 = vmatpush3.bf16.msra.mxu1 %v640_v16 }
  0x4d   :  { %568 = vmatprep.subr.bf16.mxu0 %v773_v0  ;;  %588 = vmatprep.subr.bf16.mxu1 %v773_v0 }
  0x50   :  { %569 = vmatpush3.bf16.msra.mxu0 %v632_v13  ;;  %589 = vmatpush3.bf16.msra.mxu1 %v641_v17 }
  0x51   :  { %594 = vmatprep.subr.bf16.mxu0 %v773_v0 }
  0x53   :  { %571 = vmatmul.mubr.bf16.vlgmr.msra.gmra.mxu0 %v633_v14 }
  0x54   :  { %610 = vmatprep.mubr.msk.bf16.mxu0 %vm774_vm0, %v773_v0  ;;  %595 = vmatpush3.bf16.msra.mxu0 %v642_v18 }
  0x55   :  { %596 = vmatprep.subr.bf16.mxu0 %v773_v0 }
  0x58   :  { %597 = vmatpush3.bf16.msra.mxu0 %v643_v19 }
  0x59   :  { %598 = vmatprep.subr.bf16.mxu0 %v773_v0 }
  0x5c   :  { %599 = vmatpush3.bf16.msra.mxu0 %v644_v20 }
  0x5d   :  { %600 = vmatprep.subr.bf16.mxu0 %v773_v0 }
  0x60   :  { %601 = vmatpush3.bf16.msra.mxu0 %v645_v31 }
  0x61   :  { %602 = vmatprep.subr.bf16.mxu0 %v773_v0 }
  0x64   :  { %603 = vmatpush3.bf16.msra.mxu0 %v646_v32 }
  0x65   :  { %604 = vmatprep.subr.bf16.mxu0 %v773_v0 }
  0x68   :  { %605 = vmatpush3.bf16.msra.mxu0 %v647_v33 }
  0x69   :  { %606 = vmatprep.subr.bf16.mxu0 %v773_v0 }
  0x6c   :  { %607 = vmatpush3.bf16.msra.mxu0 %v648_v34 }
  0x6d   :  { %608 = vmatprep.subr.bf16.mxu0 %v773_v0 }
  0x70   :  { %609 = vmatpush3.bf16.msra.mxu0 %v649_v35 }
 0x113   :  { %v200_v22 = vpop.f32.mrf.mxu0 }
 0x114   :  { %v201_v24 = vadd.f32 %v487_v21, %v200_v22 }
 0x115   :  { %v572_v23 = vpop.f32.mrf.mxu0 }
 0x116   :  { %v207_v28 = vmax.f32 %v201_v24, 0.0 }
 0x117   :  { %v203_v25 = vpop.f32.mrf.mxu0 }
 0x118   :  { %v204_v26 = vadd.f32 %v487_v21, %v203_v25 }
 0x119   :  { %v573_v27 = vpop.f32.mrf.mxu0 }
 0x11a   :  { %v208_v29 = vmax.f32 %v204_v26, 0.0 }
 0x11c   :  { %v209_v30 = vpack.c.bf16 %v208_v29, %v207_v28 }
 0x11e   :  { %591 = vmatmul.mubr.bf16.vlgmr.msra.gmra.mxu1 %v209_v30 }
 0x1de   :  { %v315_v37 = vpop.f32.mrf.mxu1 }
 0x1df   :  { %v316_v39 = vadd.f32 %v497_v36, %v315_v37 }
 0x1e0   :  { %v592_v38 = vpop.f32.mrf.mxu1 }
 0x1e1   :  { %v322_v43 = vmax.f32 %v316_v39, 0.0 }
 0x1e2   :  { %v318_v40 = vpop.f32.mrf.mxu1 }
 0x1e3   :  { %v319_v41 = vadd.f32 %v497_v36, %v318_v40 }
 0x1e4   :  { %v593_v42 = vpop.f32.mrf.mxu1 }
 0x1e5   :  { %v323_v44 = vmax.f32 %v319_v41, 0.0 }
 0x1e7   :  { %v525_v45 = vpack.c.bf16 %v323_v44, %v322_v43 }
 0x1e9   :  { %526 = vst [vmem:[#allocation2] sm:$0xff] %v525_v45  }
 0x1f0   :  { %v650_v46 = vld [vmem:[#allocation2] sm:$0xff]  }
 0x1f1   :  { %611 = vmatmul.mubr.bf16.vlgmr.msra.gmra.mxu0 %v650_v46 }
 0x2b1   :  { %v447_v48 = vpop.f32.mrf.mxu0 }
 0x2b2   :  { %v448_v49 = vadd.f32 %v508_v47, %v447_v48 }
 0x2b3   :  { %v612_v50 = vpop.f32.mrf.mxu0 }
 0x2b4   :  { %v518_v51 = vmul.f32 -1.442695, %v448_v49 }
 0x2b5   :  { %v450_v52 = vpop.f32.mrf.mxu0 }
 0x2b6   :  { %651 = vpow2.f32 %v518_v51  ;;  %v451_v53 = vadd.f32 %v508_v47, %v450_v52 }
 0x2b7   :  { %v613_v54 = vpop.f32.mrf.mxu0 }
 0x2b8   :  { %v519_v55 = vmul.f32 -1.442695, %v451_v53 }
 0x2ba   :  { %653 = vpow2.f32 %v519_v55 }
 0x2c3   :  { %v652_v56 = vpop.eup %651 }
 0x2c4   :  { %v460_v57 = vadd.f32 1.0, %v652_v56 }
 0x2c6   :  { %655 = vrcp.f32 %v460_v57 }
 0x2c7   :  { %v654_v58 = vpop.eup %653 }
 0x2c8   :  { %v461_v59 = vadd.f32 1.0, %v654_v58 }
 0x2ca   :  { %657 = vrcp.f32 %v461_v59 }
 0x2d3   :  { %v656_v60 = vpop.eup %655 }
 0x2d4   :  { %466 = vst [vmem:[#allocation11] sm:$0xff] %v656_v60 }
 0x2d7   :  { %v658_v61 = vpop.eup %657 }
 0x2d8   :  { %467 = vst [vmem:[#allocation11 + $0x8] sm:$0xff] %v658_v61 }
 0x2d9   :  { %750 = shalt.err (!%p747_p10)
}
 0x2da   :  { %s776_s25 = smov 128   ;;  %s777_s26 = smov 8  }
 0x2db   :  { %479 = dma.vmem_to_hbm [thread:$0]  %s474_s24, 256, %s891_s7, [#allocation5], %s776_s25, %s776_s25, %s777_s26  }
 0x2dc   :  { %765 = dma.done.wait [#allocation5], 256  }
 0x2dd   :  { %766 = vsyncadd [#allocation5], 4294967040 }
 0x2de   :  { %483 = vsyncpa [#allocation4], 1 }
 0x2df   :  { %484 = vsyncpa [#allocation7], 1 }
 0x2e0   :  { %485 = vsyncpa [#allocation10], 1 }
 0x2e1   :  { %486 = vsyncpa [#allocation5], 1 }

</bundles_post_ra>
